<compile_context>
chip_gen: v7x
topology: tpu7x:2x2x1
jax: 0.10.0
libtpu: 0.0.40
codegen_flags: <defaults>
</compile_context>

<pallas_src>
import numpy as np
import jax
import jax.numpy as jnp
from jax.experimental import pallas as pl
from jax.experimental.pallas import tpu as pltpu


def _size_loss_kernel(x_ref, t_ref, oc_ref, cnt_ref):
    # x_ref  : (C, T, L)  logits tile (native dtype), batch dim squeezed.
    # t_ref  : (T, L)     integer label tile (native int dtype).
    # oc_ref : (C, L) f32 running sum over rows of softmax(x, axis=class).
    # cnt_ref: (K, L) f32 running per-class-value histogram rows (K == W).
    s = pl.program_id(1)

    @pl.when(s == 0)
    def _init():
        oc_ref[...] = jnp.zeros_like(oc_ref)
        cnt_ref[...] = jnp.zeros_like(cnt_ref)

    # --- softmax over the class axis, partial spatial sum over this row tile ---
    x = x_ref[...].astype(jnp.float32)                 # upcast AFTER the (narrow) DMA
    m = jnp.max(x, axis=0, keepdims=True)              # (1, T, L)
    e = jnp.exp(x - m)                                 # (C, T, L)
    # One reciprocal per spatial position instead of C divides per position.
    inv = pl.reciprocal(jnp.sum(e, axis=0, keepdims=True), approx=False)
    oc_ref[...] += jnp.sum(e * inv, axis=1)            # (C, L)

    # --- label histogram: K lane-dense compares, one (1, L) row per value -----
    # TODO(synk): torch.unique has a data-dependent output length; a static
    # kernel assumes labels are exactly {0..W-1} per batch element (the same
    # assumption the original `target_counts[b, :] = counts` broadcast requires).
    t = t_ref[...].astype(jnp.int32)                   # (T, L)
    K = cnt_ref.shape[0]
    for k in range(K):                                 # static, K == W (small)
        cnt_ref[pl.ds(k, 1), :] += jnp.sum((t == k).astype(jnp.float32),
                                           axis=0, keepdims=True)


def _pick_group(dh, w):
    """Largest r with r*W <= 128 lanes and r | DH (pure reshape, no data move)."""
    if w >= 128:
        return 1
    r_max = max(1, min(128 // w, dh))
    for r in range(r_max, 0, -1):
        if dh % r == 0:
            return r
    return 1


def _pick_t_rows(rows, c, lanes, itemsize, budget_bytes=2 << 20):
    """Largest row tile (multiple of 8, dividing ROWS) whose blocks fit the budget."""
    def blk(t):
        return (c * itemsize + 4) * t * lanes          # logits block + label block
    if rows < 8 or rows % 8 != 0 or blk(rows) <= budget_bytes:
        return rows                                    # full extent is always legal
    best = 8
    for t in range(8, rows, 8):
        if rows % t == 0 and blk(t) <= budget_bytes:
            best = t
    return best


def size_loss(output, target, margin=0.1, t_rows=None):
    """Pallas implementation of SizeLoss.forward.

    output: (B, C, D, H, W) float logits (any float dtype; DMA'd as-is).
    target: (B, 1, D, H, W) integer labels in [0, W), all W values present per batch.
    """
    B, C, D, H, W = output.shape
    assert target.shape == (B, 1, D, H, W)
    DH = D * H
    K = W  # PyTorch's `target_counts[b, :] = counts` broadcast requires len(counts) == W

    R = _pick_group(DH, W)      # lane-group factor: pack R consecutive (d,h) rows per vreg row
    L = R * W                   # lane width (128 when W divides 128 and DH % (128//W) == 0)
    ROWS = DH // R

    x = output.reshape(B, C, ROWS, L)   # pure reshape: native dtype, no HBM copy
    t = target.reshape(B, ROWS, L)      # lane-dense labels, native int dtype

    if t_rows is None:
        t_rows = _pick_t_rows(ROWS, C, L, x.dtype.itemsize)
    assert ROWS % t_rows == 0 and (t_rows % 8 == 0 or t_rows == ROWS)
    n_tiles = ROWS // t_rows

    oc_lane, cnt_lane = pl.pallas_call(
        _size_loss_kernel,
        out_shape=(jax.ShapeDtypeStruct((B, C, L), jnp.float32),
                   jax.ShapeDtypeStruct((B, K, L), jnp.float32)),
        grid_spec=pltpu.PrefetchScalarGridSpec(
            num_scalar_prefetch=0,
            grid=(B, n_tiles),
            in_specs=[
                pl.BlockSpec((None, C, t_rows, L), lambda b, s: (b, 0, s, 0)),
                pl.BlockSpec((None, t_rows, L), lambda b, s: (b, s, 0)),
            ],
            out_specs=[
                pl.BlockSpec((None, C, L), lambda b, s: (b, 0, 0)),
                pl.BlockSpec((None, K, L), lambda b, s: (b, 0, 0)),
            ],
        ),
        compiler_params=pltpu.CompilerParams(
            dimension_semantics=("parallel", "arbitrary"),
            vmem_limit_bytes=32 * 1024 * 1024,
        ),
    )(x, t)

    # --- tiny epilogue in plain JAX (B*C*L + B*K*L floats) --------------------
    oc = oc_lane.reshape(B, C, R, W).sum(axis=2)       # (B, C, W) output_counts
    counts = cnt_lane.sum(axis=2)                      # (B, W)    target_counts (sorted values)
    tc = jnp.broadcast_to(counts[:, None, :], oc.shape)
    lower = tc * (1.0 - margin)
    upper = tc * (1.0 + margin)
    too_small = (oc < lower).astype(jnp.float32)
    too_big = (oc > upper).astype(jnp.float32)
    res = (too_small[:, 1:] * (oc - lower)[:, 1:] ** 2
           + too_big[:, 1:] * (oc - upper)[:, 1:] ** 2)
    return jnp.mean(res / float(D * H * W))


def size_loss_ref(output, target, margin=0.1):
    """Pure-JAX reference replicating the PyTorch forward exactly."""
    B, C, D, H, W = output.shape
    sm = jax.nn.softmax(output.astype(jnp.float32), axis=1)
    oc = jnp.sum(sm, axis=(2, 3))                      # (B, C, W)
    rows = []
    for b in range(B):
        tb = target[b].reshape(-1)
        rows.append(jnp.array([jnp.sum(tb == k) for k in range(W)], jnp.float32))
    counts = jnp.stack(rows)                           # (B, W): unique counts, sorted
    tc = jnp.broadcast_to(counts[:, None, :], oc.shape)
    lower = tc * (1.0 - margin)
    upper = tc * (1.0 + margin)
    too_small = (oc < lower).astype(jnp.float32)
    too_big = (oc > upper).astype(jnp.float32)
    res = too_small[:, 1:] * (oc - lower)[:, 1:] ** 2 + too_big[:, 1:] * (oc - upper)[:, 1:] ** 2
    return jnp.mean(res / (D * H * W))


if __name__ == "__main__":
    B, C, D, H, W = 2, 4, 8, 32, 8
    key = jax.random.PRNGKey(0)
    k1, k2 = jax.random.split(key)

    output = jax.random.normal(k1, (B, C, D, H, W), jnp.float32) * 3.0
    labels = jax.random.randint(k2, (B, D * H * W), 0, W)
    # Guarantee every value 0..W-1 appears per batch (the original torch code needs
    # exactly W unique values for its `target_counts[b, :] = counts` broadcast).
    labels = labels.at[:, :W].set(jnp.broadcast_to(jnp.arange(W), (B, W)))
    target = labels.reshape(B, 1, D, H, W).astype(jnp.int32)

    loss_ref = jax.block_until_ready(size_loss_ref(output, target, margin=0.1))

    # Auto tile selection (single row-tile per batch).
    loss = jax.block_until_ready(size_loss(output, target, margin=0.1))
    np.testing.assert_allclose(np.asarray(loss), np.asarray(loss_ref),
                               rtol=1e-4, atol=1e-6)

    # Forced multi-tile reduction path over the row axis (2 reduction steps).
    loss_tiled = jax.block_until_ready(size_loss(output, target, margin=0.1, t_rows=8))
    np.testing.assert_allclose(np.asarray(loss_tiled), np.asarray(loss_ref),
                               rtol=1e-4, atol=1e-6)

    # bf16 logits: DMA'd in native dtype, upcast inside the kernel.
    out_bf16 = output.astype(jnp.bfloat16)
    loss_bf16 = jax.block_until_ready(size_loss(out_bf16, target, margin=0.1))
    loss_bf16_ref = jax.block_until_ready(size_loss_ref(out_bf16, target, margin=0.1))
    np.testing.assert_allclose(np.asarray(loss_bf16), np.asarray(loss_bf16_ref),
                               rtol=1e-3, atol=1e-5)

    print("KERNEL_OK")
</pallas_src>

<mosaic_0001>
module attributes {stable_mosaic.version = 11 : i64} {
  func.func @_size_loss_kernel(%arg0: i32, %arg1: i32, %arg2: memref<1x4x16x128xf32, #tpu.memory_space<vmem>>, %arg3: memref<1x16x128xi32, #tpu.memory_space<vmem>>, %arg4: memref<1x4x128xf32, #tpu.memory_space<vmem>>, %arg5: memref<1x8x128xf32, #tpu.memory_space<vmem>>) attributes {dimension_semantics = [#tpu.dimension_semantics<parallel>, #tpu.dimension_semantics<arbitrary>], iteration_bounds = array<i64: 2, 1>, scalar_prefetch = 0 : i64, scratch_operands = 0 : i64, tpu.core_type = #tpu.core_type<tc>, window_params = [{transform_indices = @transform_0, window_bounds = array<i64: 1, 4, 16, 128>}, {transform_indices = @transform_1, window_bounds = array<i64: 1, 16, 128>}, {transform_indices = @transform_2, window_bounds = array<i64: 1, 4, 128>}, {transform_indices = @transform_3, window_bounds = array<i64: 1, 8, 128>}]} {
    %c0_i32 = arith.constant 0 : i32
    %0 = arith.cmpi eq, %arg1, %c0_i32 : i32
    %1 = arith.extui %0 : i1 to i32
    %c0_i32_0 = arith.constant 0 : i32
    %2 = arith.cmpi ne, %1, %c0_i32_0 : i32
    scf.if %2 {
      %cst_65 = arith.constant 0.000000e+00 : f32
      %120 = vector.broadcast %cst_65 : f32 to vector<4x128xf32>
      %c0_66 = arith.constant 0 : index
      %c0_67 = arith.constant 0 : index
      %c0_68 = arith.constant 0 : index
      %121 = vector.load %arg4[%c0_66, %c0_67, %c0_68] : memref<1x4x128xf32, #tpu.memory_space<vmem>>, vector<1x4x128xf32>
      %122 = vector.shape_cast %121 : vector<1x4x128xf32> to vector<4x128xf32>
      %123 = vector.shape_cast %120 : vector<4x128xf32> to vector<1x4x128xf32>
      tpu.vector_store %arg4[%c0_66, %c0_67, %c0_68], %123 {strides = array<i32>} : memref<1x4x128xf32, #tpu.memory_space<vmem>>, vector<1x4x128xf32>,
      %cst_69 = arith.constant 0.000000e+00 : f32
      %124 = vector.broadcast %cst_69 : f32 to vector<8x128xf32>
      %c0_70 = arith.constant 0 : index
      %c0_71 = arith.constant 0 : index
      %c0_72 = arith.constant 0 : index
      %125 = vector.load %arg5[%c0_70, %c0_71, %c0_72] : memref<1x8x128xf32, #tpu.memory_space<vmem>>, vector<1x8x128xf32>
      %126 = vector.shape_cast %125 : vector<1x8x128xf32> to vector<8x128xf32>
      %127 = vector.shape_cast %124 : vector<8x128xf32> to vector<1x8x128xf32>
      tpu.vector_store %arg5[%c0_70, %c0_71, %c0_72], %127 {strides = array<i32>} : memref<1x8x128xf32, #tpu.memory_space<vmem>>, vector<1x8x128xf32>,
    } else {
    }
    %c0 = arith.constant 0 : index
    %c0_1 = arith.constant 0 : index
    %c0_2 = arith.constant 0 : index
    %c0_3 = arith.constant 0 : index
    %3 = vector.load %arg2[%c0, %c0_1, %c0_2, %c0_3] : memref<1x4x16x128xf32, #tpu.memory_space<vmem>>, vector<1x4x16x128xf32>
    %4 = vector.shape_cast %3 : vector<1x4x16x128xf32> to vector<4x16x128xf32>
    %cst = arith.constant dense<0xFF800000> : vector<16x128xf32>
    %5 = vector.multi_reduction <maximumf>, %4, %cst [0] : vector<4x16x128xf32> to vector<16x128xf32>
    %6 = vector.shape_cast %5 : vector<16x128xf32> to vector<1x16x128xf32>
    %7 = vector.broadcast %6 : vector<1x16x128xf32> to vector<4x16x128xf32>
    %8 = arith.subf %4, %7 : vector<4x16x128xf32>
    %9 = math.exp %8 : vector<4x16x128xf32>
    %cst_4 = arith.constant dense<0.000000e+00> : vector<16x128xf32>
    %10 = vector.multi_reduction <add>, %9, %cst_4 [0] : vector<4x16x128xf32> to vector<16x128xf32>
    %11 = vector.shape_cast %10 : vector<16x128xf32> to vector<1x16x128xf32>
    %12 = tpu.reciprocal %11 : vector<1x16x128xf32> -> vector<1x16x128xf32>
    %c0_5 = arith.constant 0 : index
    %c0_6 = arith.constant 0 : index
    %c0_7 = arith.constant 0 : index
    %13 = vector.load %arg4[%c0_5, %c0_6, %c0_7] : memref<1x4x128xf32, #tpu.memory_space<vmem>>, vector<1x4x128xf32>
    %14 = vector.shape_cast %13 : vector<1x4x128xf32> to vector<4x128xf32>
    %15 = vector.broadcast %12 : vector<1x16x128xf32> to vector<4x16x128xf32>
    %16 = arith.mulf %9, %15 : vector<4x16x128xf32>
    %cst_8 = arith.constant dense<0.000000e+00> : vector<4x128xf32>
    %17 = vector.multi_reduction <add>, %16, %cst_8 [1] : vector<4x16x128xf32> to vector<4x128xf32>
    %18 = arith.addf %14, %17 : vector<4x128xf32>
    %c0_9 = arith.constant 0 : index
    %c0_10 = arith.constant 0 : index
    %c0_11 = arith.constant 0 : index
    %19 = vector.load %arg4[%c0_9, %c0_10, %c0_11] : memref<1x4x128xf32, #tpu.memory_space<vmem>>, vector<1x4x128xf32>
    %20 = vector.shape_cast %19 : vector<1x4x128xf32> to vector<4x128xf32>
    %21 = vector.shape_cast %18 : vector<4x128xf32> to vector<1x4x128xf32>
    tpu.vector_store %arg4[%c0_9, %c0_10, %c0_11], %21 {strides = array<i32>} : memref<1x4x128xf32, #tpu.memory_space<vmem>>, vector<1x4x128xf32>,
    %c0_12 = arith.constant 0 : index
    %c0_13 = arith.constant 0 : index
    %c0_14 = arith.constant 0 : index
    %22 = vector.load %arg3[%c0_12, %c0_13, %c0_14] : memref<1x16x128xi32, #tpu.memory_space<vmem>>, vector<1x16x128xi32>
    %23 = vector.shape_cast %22 : vector<1x16x128xi32> to vector<16x128xi32>
    %c0_15 = arith.constant 0 : index
    %c0_16 = arith.constant 0 : index
    %c0_17 = arith.constant 0 : index
    %24 = vector.load %arg5[%c0_15, %c0_16, %c0_17] : memref<1x8x128xf32, #tpu.memory_space<vmem>>, vector<1x1x128xf32>
    %25 = vector.shape_cast %24 : vector<1x1x128xf32> to vector<1x128xf32>
    %c0_i32_18 = arith.constant 0 : i32
    %26 = vector.broadcast %c0_i32_18 : i32 to vector<16x128xi32>
    %27 = arith.cmpi eq, %23, %26 : vector<16x128xi32>
    %28 = arith.extui %27 : vector<16x128xi1> to vector<16x128xi32>
    %29 = arith.sitofp %28 : vector<16x128xi32> to vector<16x128xf32>
    %cst_19 = arith.constant dense<0.000000e+00> : vector<128xf32>
    %30 = vector.multi_reduction <add>, %29, %cst_19 [0] : vector<16x128xf32> to vector<128xf32>
    %31 = vector.shape_cast %30 : vector<128xf32> to vector<1x128xf32>
    %32 = arith.addf %25, %31 : vector<1x128xf32>
    %c0_20 = arith.constant 0 : index
    %c0_21 = arith.constant 0 : index
    %c0_22 = arith.constant 0 : index
    %33 = vector.load %arg5[%c0_20, %c0_21, %c0_22] : memref<1x8x128xf32, #tpu.memory_space<vmem>>, vector<1x1x128xf32>
    %34 = vector.shape_cast %33 : vector<1x1x128xf32> to vector<1x128xf32>
    %35 = vector.shape_cast %32 : vector<1x128xf32> to vector<1x1x128xf32>
    tpu.vector_store %arg5[%c0_20, %c0_21, %c0_22], %35 {strides = array<i32>} : memref<1x8x128xf32, #tpu.memory_space<vmem>>, vector<1x1x128xf32>,
    %c0_23 = arith.constant 0 : index
    %c1 = arith.constant 1 : index
    %c0_24 = arith.constant 0 : index
    %36 = vector.load %arg5[%c0_23, %c1, %c0_24] : memref<1x8x128xf32, #tpu.memory_space<vmem>>, vector<1x1x128xf32>
    %37 = vector.shape_cast %36 : vector<1x1x128xf32> to vector<1x128xf32>
    %c1_i32 = arith.constant 1 : i32
    %38 = vector.broadcast %c1_i32 : i32 to vector<16x128xi32>
    %39 = arith.cmpi eq, %23, %38 : vector<16x128xi32>
    %40 = arith.extui %39 : vector<16x128xi1> to vector<16x128xi32>
    %41 = arith.sitofp %40 : vector<16x128xi32> to vector<16x128xf32>
    %cst_25 = arith.constant dense<0.000000e+00> : vector<128xf32>
    %42 = vector.multi_reduction <add>, %41, %cst_25 [0] : vector<16x128xf32> to vector<128xf32>
    %43 = vector.shape_cast %42 : vector<128xf32> to vector<1x128xf32>
    %44 = arith.addf %37, %43 : vector<1x128xf32>
    %c0_26 = arith.constant 0 : index
    %c1_27 = arith.constant 1 : index
    %c0_28 = arith.constant 0 : index
    %45 = vector.load %arg5[%c0_26, %c1_27, %c0_28] : memref<1x8x128xf32, #tpu.memory_space<vmem>>, vector<1x1x128xf32>
    %46 = vector.shape_cast %45 : vector<1x1x128xf32> to vector<1x128xf32>
    %47 = vector.shape_cast %44 : vector<1x128xf32> to vector<1x1x128xf32>
    tpu.vector_store %arg5[%c0_26, %c1_27, %c0_28], %47 {strides = array<i32>} : memref<1x8x128xf32, #tpu.memory_space<vmem>>, vector<1x1x128xf32>,
    %c0_29 = arith.constant 0 : index
    %c2 = arith.constant 2 : index
    %c0_30 = arith.constant 0 : index
    %48 = vector.load %arg5[%c0_29, %c2, %c0_30] : memref<1x8x128xf32, #tpu.memory_space<vmem>>, vector<1x1x128xf32>
    %49 = vector.shape_cast %48 : vector<1x1x128xf32> to vector<1x128xf32>
    %c2_i32 = arith.constant 2 : i32
    %50 = vector.broadcast %c2_i32 : i32 to vector<16x128xi32>
    %51 = arith.cmpi eq, %23, %50 : vector<16x128xi32>
    %52 = arith.extui %51 : vector<16x128xi1> to vector<16x128xi32>
    %53 = arith.sitofp %52 : vector<16x128xi32> to vector<16x128xf32>
    %cst_31 = arith.constant dense<0.000000e+00> : vector<128xf32>
    %54 = vector.multi_reduction <add>, %53, %cst_31 [0] : vector<16x128xf32> to vector<128xf32>
    %55 = vector.shape_cast %54 : vector<128xf32> to vector<1x128xf32>
    %56 = arith.addf %49, %55 : vector<1x128xf32>
    %c0_32 = arith.constant 0 : index
    %c2_33 = arith.constant 2 : index
    %c0_34 = arith.constant 0 : index
    %57 = vector.load %arg5[%c0_32, %c2_33, %c0_34] : memref<1x8x128xf32, #tpu.memory_space<vmem>>, vector<1x1x128xf32>
    %58 = vector.shape_cast %57 : vector<1x1x128xf32> to vector<1x128xf32>
    %59 = vector.shape_cast %56 : vector<1x128xf32> to vector<1x1x128xf32>
    tpu.vector_store %arg5[%c0_32, %c2_33, %c0_34], %59 {strides = array<i32>} : memref<1x8x128xf32, #tpu.memory_space<vmem>>, vector<1x1x128xf32>,
    %c0_35 = arith.constant 0 : index
    %c3 = arith.constant 3 : index
    %c0_36 = arith.constant 0 : index
    %60 = vector.load %arg5[%c0_35, %c3, %c0_36] : memref<1x8x128xf32, #tpu.memory_space<vmem>>, vector<1x1x128xf32>
    %61 = vector.shape_cast %60 : vector<1x1x128xf32> to vector<1x128xf32>
    %c3_i32 = arith.constant 3 : i32
    %62 = vector.broadcast %c3_i32 : i32 to vector<16x128xi32>
    %63 = arith.cmpi eq, %23, %62 : vector<16x128xi32>
    %64 = arith.extui %63 : vector<16x128xi1> to vector<16x128xi32>
    %65 = arith.sitofp %64 : vector<16x128xi32> to vector<16x128xf32>
    %cst_37 = arith.constant dense<0.000000e+00> : vector<128xf32>
    %66 = vector.multi_reduction <add>, %65, %cst_37 [0] : vector<16x128xf32> to vector<128xf32>
    %67 = vector.shape_cast %66 : vector<128xf32> to vector<1x128xf32>
    %68 = arith.addf %61, %67 : vector<1x128xf32>
    %c0_38 = arith.constant 0 : index
    %c3_39 = arith.constant 3 : index
    %c0_40 = arith.constant 0 : index
    %69 = vector.load %arg5[%c0_38, %c3_39, %c0_40] : memref<1x8x128xf32, #tpu.memory_space<vmem>>, vector<1x1x128xf32>
    %70 = vector.shape_cast %69 : vector<1x1x128xf32> to vector<1x128xf32>
    %71 = vector.shape_cast %68 : vector<1x128xf32> to vector<1x1x128xf32>
    tpu.vector_store %arg5[%c0_38, %c3_39, %c0_40], %71 {strides = array<i32>} : memref<1x8x128xf32, #tpu.memory_space<vmem>>, vector<1x1x128xf32>,
    %c0_41 = arith.constant 0 : index
    %c4 = arith.constant 4 : index
    %c0_42 = arith.constant 0 : index
    %72 = vector.load %arg5[%c0_41, %c4, %c0_42] : memref<1x8x128xf32, #tpu.memory_space<vmem>>, vector<1x1x128xf32>
    %73 = vector.shape_cast %72 : vector<1x1x128xf32> to vector<1x128xf32>
    %c4_i32 = arith.constant 4 : i32
    %74 = vector.broadcast %c4_i32 : i32 to vector<16x128xi32>
    %75 = arith.cmpi eq, %23, %74 : vector<16x128xi32>
    %76 = arith.extui %75 : vector<16x128xi1> to vector<16x128xi32>
    %77 = arith.sitofp %76 : vector<16x128xi32> to vector<16x128xf32>
    %cst_43 = arith.constant dense<0.000000e+00> : vector<128xf32>
    %78 = vector.multi_reduction <add>, %77, %cst_43 [0] : vector<16x128xf32> to vector<128xf32>
    %79 = vector.shape_cast %78 : vector<128xf32> to vector<1x128xf32>
    %80 = arith.addf %73, %79 : vector<1x128xf32>
    %c0_44 = arith.constant 0 : index
    %c4_45 = arith.constant 4 : index
    %c0_46 = arith.constant 0 : index
    %81 = vector.load %arg5[%c0_44, %c4_45, %c0_46] : memref<1x8x128xf32, #tpu.memory_space<vmem>>, vector<1x1x128xf32>
    %82 = vector.shape_cast %81 : vector<1x1x128xf32> to vector<1x128xf32>
    %83 = vector.shape_cast %80 : vector<1x128xf32> to vector<1x1x128xf32>
    tpu.vector_store %arg5[%c0_44, %c4_45, %c0_46], %83 {strides = array<i32>} : memref<1x8x128xf32, #tpu.memory_space<vmem>>, vector<1x1x128xf32>,
    %c0_47 = arith.constant 0 : index
    %c5 = arith.constant 5 : index
    %c0_48 = arith.constant 0 : index
    %84 = vector.load %arg5[%c0_47, %c5, %c0_48] : memref<1x8x128xf32, #tpu.memory_space<vmem>>, vector<1x1x128xf32>
    %85 = vector.shape_cast %84 : vector<1x1x128xf32> to vector<1x128xf32>
    %c5_i32 = arith.constant 5 : i32
    %86 = vector.broadcast %c5_i32 : i32 to vector<16x128xi32>
    %87 = arith.cmpi eq, %23, %86 : vector<16x128xi32>
    %88 = arith.extui %87 : vector<16x128xi1> to vector<16x128xi32>
    %89 = arith.sitofp %88 : vector<16x128xi32> to vector<16x128xf32>
    %cst_49 = arith.constant dense<0.000000e+00> : vector<128xf32>
    %90 = vector.multi_reduction <add>, %89, %cst_49 [0] : vector<16x128xf32> to vector<128xf32>
    %91 = vector.shape_cast %90 : vector<128xf32> to vector<1x128xf32>
    %92 = arith.addf %85, %91 : vector<1x128xf32>
    %c0_50 = arith.constant 0 : index
    %c5_51 = arith.constant 5 : index
    %c0_52 = arith.constant 0 : index
    %93 = vector.load %arg5[%c0_50, %c5_51, %c0_52] : memref<1x8x128xf32, #tpu.memory_space<vmem>>, vector<1x1x128xf32>
    %94 = vector.shape_cast %93 : vector<1x1x128xf32> to vector<1x128xf32>
    %95 = vector.shape_cast %92 : vector<1x128xf32> to vector<1x1x128xf32>
    tpu.vector_store %arg5[%c0_50, %c5_51, %c0_52], %95 {strides = array<i32>} : memref<1x8x128xf32, #tpu.memory_space<vmem>>, vector<1x1x128xf32>,
    %c0_53 = arith.constant 0 : index
    %c6 = arith.constant 6 : index
    %c0_54 = arith.constant 0 : index
    %96 = vector.load %arg5[%c0_53, %c6, %c0_54] : memref<1x8x128xf32, #tpu.memory_space<vmem>>, vector<1x1x128xf32>
    %97 = vector.shape_cast %96 : vector<1x1x128xf32> to vector<1x128xf32>
    %c6_i32 = arith.constant 6 : i32
    %98 = vector.broadcast %c6_i32 : i32 to vector<16x128xi32>
    %99 = arith.cmpi eq, %23, %98 : vector<16x128xi32>
    %100 = arith.extui %99 : vector<16x128xi1> to vector<16x128xi32>
    %101 = arith.sitofp %100 : vector<16x128xi32> to vector<16x128xf32>
    %cst_55 = arith.constant dense<0.000000e+00> : vector<128xf32>
    %102 = vector.multi_reduction <add>, %101, %cst_55 [0] : vector<16x128xf32> to vector<128xf32>
    %103 = vector.shape_cast %102 : vector<128xf32> to vector<1x128xf32>
    %104 = arith.addf %97, %103 : vector<1x128xf32>
    %c0_56 = arith.constant 0 : index
    %c6_57 = arith.constant 6 : index
    %c0_58 = arith.constant 0 : index
    %105 = vector.load %arg5[%c0_56, %c6_57, %c0_58] : memref<1x8x128xf32, #tpu.memory_space<vmem>>, vector<1x1x128xf32>
    %106 = vector.shape_cast %105 : vector<1x1x128xf32> to vector<1x128xf32>
    %107 = vector.shape_cast %104 : vector<1x128xf32> to vector<1x1x128xf32>
    tpu.vector_store %arg5[%c0_56, %c6_57, %c0_58], %107 {strides = array<i32>} : memref<1x8x128xf32, #tpu.memory_space<vmem>>, vector<1x1x128xf32>,
    %c0_59 = arith.constant 0 : index
    %c7 = arith.constant 7 : index
    %c0_60 = arith.constant 0 : index
    %108 = vector.load %arg5[%c0_59, %c7, %c0_60] : memref<1x8x128xf32, #tpu.memory_space<vmem>>, vector<1x1x128xf32>
    %109 = vector.shape_cast %108 : vector<1x1x128xf32> to vector<1x128xf32>
    %c7_i32 = arith.constant 7 : i32
    %110 = vector.broadcast %c7_i32 : i32 to vector<16x128xi32>
    %111 = arith.cmpi eq, %23, %110 : vector<16x128xi32>
    %112 = arith.extui %111 : vector<16x128xi1> to vector<16x128xi32>
    %113 = arith.sitofp %112 : vector<16x128xi32> to vector<16x128xf32>
    %cst_61 = arith.constant dense<0.000000e+00> : vector<128xf32>
    %114 = vector.multi_reduction <add>, %113, %cst_61 [0] : vector<16x128xf32> to vector<128xf32>
    %115 = vector.shape_cast %114 : vector<128xf32> to vector<1x128xf32>
    %116 = arith.addf %109, %115 : vector<1x128xf32>
    %c0_62 = arith.constant 0 : index
    %c7_63 = arith.constant 7 : index
    %c0_64 = arith.constant 0 : index
    %117 = vector.load %arg5[%c0_62, %c7_63, %c0_64] : memref<1x8x128xf32, #tpu.memory_space<vmem>>, vector<1x1x128xf32>
    %118 = vector.shape_cast %117 : vector<1x1x128xf32> to vector<1x128xf32>
    %119 = vector.shape_cast %116 : vector<1x128xf32> to vector<1x1x128xf32>
    tpu.vector_store %arg5[%c0_62, %c7_63, %c0_64], %119 {strides = array<i32>} : memref<1x8x128xf32, #tpu.memory_space<vmem>>, vector<1x1x128xf32>,
    return
  }
  func.func @transform_0(%arg0: i32, %arg1: i32) -> (i32, i32, i32, i32) {
    %c0_i32 = arith.constant 0 : i32
    %c0_i32_0 = arith.constant 0 : i32
    %c0_i32_1 = arith.constant 0 : i32
    return %arg0, %c0_i32, %arg1, %c0_i32_0 : i32, i32, i32, i32
  }
  func.func @transform_1(%arg0: i32, %arg1: i32) -> (i32, i32, i32) {
    %c0_i32 = arith.constant 0 : i32
    %c0_i32_0 = arith.constant 0 : i32
    return %arg0, %arg1, %c0_i32 : i32, i32, i32
  }
  func.func @transform_2(%arg0: i32, %arg1: i32) -> (i32, i32, i32) {
    %c0_i32 = arith.constant 0 : i32
    %c0_i32_0 = arith.constant 0 : i32
    %c0_i32_1 = arith.constant 0 : i32
    return %arg0, %c0_i32, %c0_i32_0 : i32, i32, i32
  }
  func.func @transform_3(%arg0: i32, %arg1: i32) -> (i32, i32, i32) {
    %c0_i32 = arith.constant 0 : i32
    %c0_i32_0 = arith.constant 0 : i32
    %c0_i32_1 = arith.constant 0 : i32
    return %arg0, %c0_i32, %c0_i32_0 : i32, i32, i32
  }
}

</mosaic_0001>

<bundles_post_ra>
// kernel: tpu_custom_call.1
= control target key start
LH: loop header
LB: loop body
LE: loop exit
PB: predicated region body
PF: predicated region fallthrough
CT: control target
= control target key end

     0   :  { %9 = vsyncpa [#allocation3], 0  ;;  %s1349_s0 = inlined_call_operand.hbm [shape: f32[2,4,16,128], index: 0, kind: input, shape index: {}]   ;;  %s1350_s1 = inlined_call_operand.hbm [shape: s32[2,16,128], index: 1, kind: input, shape index: {}]   ;;  %s1351_s2 = inlined_call_operand.hbm [shape: f32[2,4,128], index: 2, kind: output, shape index: {0}]   ;;  %s1352_s3 = inlined_call_operand.hbm [shape: f32[2,8,128], index: 3, kind: output, shape index: {1}]  }
   0x1   :  { %11 = vsyncpa [#allocation3 + $0x1], 0 }
   0x2   :  { %12 = vsyncpa [#allocation6], 0 }
   0x3   :  { %14 = vsyncpa [#allocation6 + $0x1], 0 }
   0x4   :  { %15 = vsyncpa [#allocation4], 0 }
   0x5   :  { %17 = vsyncpa [#allocation4 + $0x1], 0 }
   0x6   :  { %18 = vsyncpa [#allocation9], 0 }
   0x7   :  { %20 = vsyncpa [#allocation9 + $0x1], 0  ;;  %s1006_s12 = smov 0   ;;  %s1008_s13 = smov 0  }
   0x8   :  { %s1010_s14 = smov 0   ;;  %s1012_s15 = smov 0  }
   0x9   :  { %s1014_s16 = smov 0   ;;  %s1016_s17 = smov 0  }
   0xa LB: > { %s665_s18 = sadd.s32 4294967295, %s977_s17   ;;  %s666_s19 = sadd.s32 4294967294, %s977_s17   ;;  %s977_s17 = sphi %s1016_s17, %s26_s17   ;;  %s973_s16 = sphi %s1014_s16, %s1370_s16   ;;  %s969_s15 = sphi %s1012_s15, %s1369_s15   ;;  %s965_s14 = sphi %s1010_s14, %s1368_s14   ;;  %s961_s13 = sphi %s1008_s13, %s1367_s13   ;;  %s957_s12 = sphi %s1006_s12, %s1366_s12  }
   0xb   : > { %s38_s20 = sadd.s32 1, %s973_s16  ;;  %s47_s21 = sadd.s32 1, %s965_s14 }
   0xc   : > { %p40_p0 = scmp.ge.s32.totalorder %s38_s20, 2  ;;  %p54_p1 = scmp.ne.s32.totalorder %s965_s14, %s961_s13 }
   0xd   : > { %p55_p2 = scmp.eq.s32.totalorder %s977_s17, 0  ;;  %p60_p3 = scmp.ne.s32.totalorder %s961_s13, %s957_s12 }
   0xe   : > { %s1372_s20 = smov (%p40_p0, %s38_s20), 0  ;;  %p61_p5 = scmp.eq.s32.totalorder %s665_s18, 0 }
   0xf   : > { %p1047_p4 = por %p55_p2, %p54_p1  ;;  %s42_s23 = ssub.s32 %s973_s16, %s1372_s20 }
  0x10   : > { %p112_p6 = scmp.eq.s32.totalorder %s665_s18, 1  ;;  %p45_p7 = scmp.eq.s32.totalorder %s42_s23, 0 }
  0x11   : > { %p1053_p8 = por %p61_p5, %p60_p3  ;;  %p118_p10 = scmp.eq.s32.totalorder %s666_s19, 1 }
  0x12   : > { %p1057_p9 = por %p112_p6, %p54_p1  ;;  %p726_p13 = scmp.lt.s32.totalorder %s977_s17, 2 }
  0x13   : > { %s1356_s24 = scalar_select %p1053_p8, 1, 0 }
  0x14   : > { %s1357_s25 = scalar_select %p1057_p9, 1, 0 }
  0x15   : > { %s1062_s26 = scalar_select %p45_p7, %s965_s14, %s47_s21  }
  0x16   : > { %p1064_p11 = por %p118_p10, %p60_p3  ;;  %s1071_s28 = sand.u32 1, %s965_s14  }
  0x17   : > { %s669_s29 = sshll.u32 %s1071_s28, 6  ;;  %s702_s30 = sshll.u32 %s973_s16, 10 }
  0x18   : > { %s1358_s27 = scalar_select %p1064_p11, 1, 0 }
  0x19   : > { %s1078_s6 = scalar_lea.hbm %s1349_s0, %s702_s30  ;;  %s168_s7 = scalar_lea.vmem [#allocation2], %s669_s29 }
  0x1a   : > { %s177_s8 = sshll.u32 %s168_s7, 4  ;;  %p1084_p0 = pnand %p726_p13, %p1047_p4  ;;  %s1080_s8 = int_to_ptr.vmem [resolvable:$true] %s177_s8 }
  0x1b   : > { %s165_s10 = scalar_lea.sflag [#allocation3], %s1071_s28  ;;  %s799_s11 = scalar_lea.hbm %s1078_s6, 1024 }
  0x1c   : > { %p800_p2 = scmp.ne.s32.totalorder %s1078_s6, %s799_s11  ;;  %p801_p3 = pneg %p1084_p0 }
  0x1d   : > { %s804_s21 = scalar_lea.hbm %s1349_s0, 2048  ;;  %p805_p4 = scmp.lt.u32.totalorder %s1078_s6, %s1349_s0 }
  0x1e   : > { %p802_p5 = pnand %p801_p3, %p800_p2  ;;  %p806_p7 = scmp.lt.u32.totalorder %s804_s21, %s799_s11 }
  0x1f   : > { %p808_p13 = scmp.lt.u32.totalorder %s799_s11, %s1078_s6 }
  0x20   : > { %p803_p6 = pneg %p802_p5  ;;  %p807_p10 = por %p806_p7, %p805_p4 }
  0x22   : > { %p809_p12 = por %p808_p13, %p807_p10 }
  0x24   : > { %p810_p1 = pnand %p809_p12, %p803_p6 }
  0x26   : > { %813 = shalt.err (!%p810_p1)
}
  0x27   : > { %s814_s29 = scalar_lea.vmem %s1080_s8, 1024  ;;  %s979_s30 = smov [#allocation2]  }
  0x28   : > { %p815_p2 = scmp.ne.s32.totalorder %s1080_s8, %s814_s29  ;;  %s819_s4 = sshll.u32 %s979_s30, 4  ;;  %s820_s4 = int_to_ptr.vmem [resolvable:$false] %s819_s4 }
  0x29   : > { %s821_s5 = scalar_lea.vmem %s820_s4, 2048  ;;  %p822_p9 = scmp.lt.s32.totalorder %s1080_s8, %s820_s4 }
  0x2a   : > { %p817_p5 = pnand %p815_p2, %p801_p3  ;;  %p823_p4 = scmp.lt.s32.totalorder %s821_s5, %s814_s29 }
  0x2c   : > { %p818_p11 = pneg %p817_p5  ;;  %p824_p7 = por %p823_p4, %p822_p9 }
  0x2e   : > { %p825_p10 = pnand %p824_p7, %p818_p11 }
  0x30   : > { %828 = shalt.err (!%p825_p10)
}
  0x31   : > { %s980_s7 = smov 128   ;;  %s981_s11 = smov 8  }
  0x32   : > { %715 = dma.hbm_to_vmem [thread:$0]  (!%p1084_p0), %s1078_s6, 1024, %s1080_s8, %s165_s10, %s980_s7, %s980_s7, %s981_s11  }
  0x33   : > { %p208_p9 = scmp.lt.s32.totalorder %s977_s17, 3  ;;  %s672_s18 = sshll.u32 %s1071_s28, 4 }
  0x34   : > { %s703_s19 = sshll.u32 %s973_s16, 8  ;;  %p1360_p11 = scmp.ge.s32.totalorder %s977_s17, 1 }
  0x35   : > { %s1132_s29 = scalar_lea.hbm %s1350_s1, %s703_s19  ;;  %s191_s30 = scalar_lea.vmem [#allocation5], %s672_s18 }
  0x36   : > { %p1125_p12 = pnand %p1360_p11, %p208_p9  ;;  %s200_s4 = sshll.u32 %s191_s30, 4  ;;  %s1134_s4 = int_to_ptr.vmem [resolvable:$true] %s200_s4 }
  0x37   : > { %s188_s6 = scalar_lea.sflag [#allocation6], %s1071_s28  ;;  %s829_s8 = scalar_lea.hbm %s1132_s29, 256 }
  0x38   : > { %p830_p1 = scmp.ne.s32.totalorder %s1132_s29, %s829_s8  ;;  %s834_s19 = scalar_lea.hbm %s1350_s1, 512 }
  0x39   : > { %p835_p2 = scmp.lt.u32.totalorder %s1132_s29, %s1350_s1  ;;  %p836_p5 = scmp.lt.u32.totalorder %s834_s19, %s829_s8 }
  0x3a   : > { %p832_p6 = pnand %p830_p1, %p801_p3  ;;  %p838_p7 = scmp.lt.u32.totalorder %s829_s8, %s1132_s29 }
  0x3b   : > { %p837_p4 = por %p836_p5, %p835_p2 }
  0x3c   : > { %p833_p13 = pneg %p832_p6 }
  0x3d   : > { %p839_p10 = por %p838_p7, %p837_p4 }
  0x3f   : > { %p840_p9 = pnand %p839_p10, %p833_p13 }
  0x41   : > { %843 = shalt.err (!%p840_p9)
}
  0x42   : > { %s844_s18 = scalar_lea.vmem %s1134_s4, 256  ;;  %s982_s30 = smov [#allocation5]  }
  0x43   : > { %p845_p11 = scmp.ne.s32.totalorder %s1134_s4, %s844_s18  ;;  %s849_s10 = sshll.u32 %s982_s30, 4  ;;  %s850_s10 = int_to_ptr.vmem [resolvable:$false] %s849_s10 }
  0x44   : > { %s851_s5 = scalar_lea.vmem %s850_s10, 512  ;;  %p852_p8 = scmp.lt.s32.totalorder %s1134_s4, %s850_s10 }
  0x45   : > { %p847_p1 = pnand %p845_p11, %p801_p3  ;;  %p853_p2 = scmp.lt.s32.totalorder %s851_s5, %s844_s18 }
  0x47   : > { %p848_p6 = pneg %p847_p1  ;;  %p854_p5 = por %p853_p2, %p852_p8 }
  0x49   : > { %p855_p4 = pnand %p854_p5, %p848_p6 }
  0x4b   : > { %858 = shalt.err (!%p855_p4)
}
  0x4c   : > { %718 = dma.hbm_to_vmem [thread:$0]  (!%p1084_p0), %s1132_s29, 256, %s1134_s4, %s188_s6, %s980_s7, %s980_s7, %s981_s11  }
  0x4d   : > { %212 = sbr.rel (%p1125_p12) target bundleno = 177 (0xb1), region = 28  ;;  %s1168_s8 = sand.u32 (!%p1125_p12), 1, %s961_s13  }
  0x4e   : > { %s676_s19 = sshll.u32 (!%p1125_p12), %s1168_s8, 6  ;;  %s215_s22 = scalar_lea.sflag (!%p1125_p12), [#allocation3], %s1168_s8 }
  0x4f   : > { %s218_s9 = scalar_lea.vmem (!%p1125_p12), [#allocation2], %s676_s19  ;;  %p1362_p8 = scmp.ne.s32.totalorder (!%p1125_p12), %s1356_s24, 0 }
  0x54   : > { %940 = dma.done.wait (%p1362_p8), %s215_s22, 1024  }
  0x55   : > { %942 = vsyncadd (%p1362_p8), %s215_s22, 4294966272  ;;  %s677_s28 = sshll.u32 %s1168_s8, 4  ;;  %s224_s7 = scalar_lea.sflag [#allocation6], %s1168_s8 }
  0x56   : > { %s227_s11 = scalar_lea.vmem [#allocation5], %s677_s28 }
  0x57   : > { %944 = dma.done.wait (%p1362_p8), %s224_s7, 256  }
  0x58   : > { %946 = vsyncadd (%p1362_p8), %s224_s7, 4294967040  ;;  %s678_s21 = sshll.u32 %s1168_s8, 2  ;;  %s679_s29 = sshll.u32 %s1168_s8, 3  ;;  %v983_v0 = vmov 0.0   ;;  %v268_v1 = vld [vmem:[%s218_s9] sm:$0xff]  ;;  %v269_v2 = vld [vmem:[%s218_s9 + $0x8] sm:$0xff] }
  0x59   : > { %s1184_s4 = scalar_lea.vmem [#allocation7], %s678_s21  ;;  %s1188_s6 = scalar_lea.vmem [#allocation8], %s679_s29  ;;  %v270_v3 = vld [vmem:[%s218_s9 + $0x10] sm:$0xff]  ;;  %v271_v4 = vld [vmem:[%s218_s9 + $0x18] sm:$0xff]  ;;  %v272_v5 = vld [vmem:[%s218_s9 + $0x20] sm:$0xff] }
  0x5a   : > { %266 = vst [vmem:[%s1184_s4] sm:$0xf] %v983_v0  ;;  %267 = vst [vmem:[%s1188_s6] sm:$0xff] %v983_v0  ;;  %v273_v6 = vld [vmem:[%s218_s9 + $0x28] sm:$0xff]  ;;  %v274_v7 = vld [vmem:[%s218_s9 + $0x30] sm:$0xff]  ;;  %v276_v9 = vmax.f32 %v268_v1, %v272_v5  ;;  %s699_s24 = sshll.u32 %s969_s15, 7  ;;  %s526_s23 = sshll.u32 %s1188_s6, 4  ;;  %s1268_s23 = int_to_ptr.vmem [resolvable:$true] %s526_s23 }
  0x5b   : > { %v275_v8 = vld [vmem:[%s218_s9 + $0x38] sm:$0xff]  ;;  %v279_v10 = vmax.f32 %v269_v2, %v273_v6  ;;  %v277_v11 = vmax.f32 %v270_v3, %v274_v7  ;;  %v1192_v13 = vld [vmem:[%s227_s11] sm:$0xff]  ;;  %s1266_s10 = scalar_lea.hbm %s1352_s3, %s699_s24  ;;  %s500_s5 = scalar_lea.sflag [#allocation9], %s1168_s8 }
  0x5c   : > { %v280_v12 = vmax.f32 %v271_v4, %v275_v8  ;;  %v1194_v14 = vld [vmem:[%s227_s11 + $0x8] sm:$0xff]  ;;  %vm367_vm0 = vcmp.eq.s32.totalorder %v1192_v13, 0  ;;  %vm383_vm2 = vcmp.eq.s32.totalorder %v1192_v13, 1  ;;  %vm399_vm4 = vcmp.eq.s32.totalorder %v1192_v13, 2  ;;  %s859_s19 = scalar_lea.vmem %s1268_s23, 128  ;;  %p1363_p3 = scmp.ne.s32.totalorder %s1357_s25, 0 }
  0x5d   : > { %vm368_vm1 = vcmp.eq.s32.totalorder %v1194_v14, 0  ;;  %vm384_vm3 = vcmp.eq.s32.totalorder %v1194_v14, 1  ;;  %v278_v15 = vmax.f32 %v276_v9, %v277_v11  ;;  %v680_v17 = vsel %vm367_vm0, 1.0, %v983_v0  ;;  %p860_p0 = scmp.ne.s32.totalorder %s1268_s23, %s859_s19  ;;  %s984_s22 = smov [#allocation8]  }
  0x5e   : > { %v281_v16 = vmax.f32 %v279_v10, %v280_v12  ;;  %v681_v18 = vsel %vm368_vm1, 1.0, %v983_v0  ;;  %v682_v20 = vsel %vm383_vm2, 1.0, %v983_v0  ;;  %v683_v21 = vsel %vm384_vm3, 1.0, %v983_v0  ;;  %s863_s9 = sshll.u32 %s984_s22, 4  ;;  %s864_s9 = int_to_ptr.vmem [resolvable:$false] %s863_s9 }
  0x5f   : > { %v373_v19 = vadd.f32 %v681_v18, %v680_v17  ;;  %v282_v22 = vsub.f32 %v268_v1, %v278_v15  ;;  %v284_v24 = vsub.f32 %v270_v3, %v278_v15  ;;  %v286_v26 = vsub.f32 %v272_v5, %v278_v15  ;;  %p861_p12 = pnand %p860_p0, %p1363_p3  ;;  %s865_s28 = scalar_lea.vmem %s864_s9, 256 }
  0x60   : > { %v283_v23 = vsub.f32 %v269_v2, %v281_v16  ;;  %v285_v25 = vsub.f32 %v271_v4, %v281_v16  ;;  %v287_v27 = vsub.f32 %v273_v6, %v281_v16  ;;  %v288_v28 = vsub.f32 %v274_v7, %v278_v15  ;;  %p866_p7 = scmp.lt.s32.totalorder %s1268_s23, %s864_s9  ;;  %p867_p10 = scmp.lt.s32.totalorder %s865_s28, %s859_s19 }
  0x61   : > { %v289_v29 = vsub.f32 %v275_v8, %v281_v16  ;;  %v290_v30 = vmul.f32 1.442695, %v282_v22  ;;  %v294_v32 = vmul.f32 1.442695, %v284_v24  ;;  %v389_v33 = vadd.f32 %v683_v21, %v682_v20  ;;  %v366_v59 = vld [vmem:[%s1188_s6] sm:$0x1]  ;;  %p862_p13 = pneg %p861_p12 }
  0x62   : > { %v292_v31 = vmul.f32 1.442695, %v283_v23  ;;  %v296_v34 = vmul.f32 1.442695, %v285_v25  ;;  %v298_v35 = vmul.f32 1.442695, %v286_v26  ;;  %p868_p9 = por %p867_p10, %p866_p7 }
  0x63   : > { %v300_v36 = vmul.f32 1.442695, %v287_v27  ;;  %779 = vpow2.f32 %v290_v30  ;;  %v302_v37 = vmul.f32 1.442695, %v288_v28  ;;  %v304_v38 = vmul.f32 1.442695, %v289_v29 }
  0x64   : > { %v374_v39 = vrot.slane %v373_v19, 4  ;;  %781 = vpow2.f32 %v292_v31  ;;  %v390_v40 = vrot.slane %v389_v33, 4  ;;  %vm400_vm5 = vcmp.eq.s32.totalorder %v1194_v14, 2  ;;  %v382_v3 = vld [vmem:[%s1188_s6 + $0x1] sm:$0x1]  ;;  %p869_p11 = pnand %p868_p9, %p862_p13 }
  0x65   : > { %v684_v41 = vsel %vm399_vm4, 1.0, %v983_v0  ;;  %783 = vpow2.f32 %v294_v32  ;;  %v685_v43 = vsel %vm400_vm5, 1.0, %v983_v0  ;;  %vm415_vm6 = vcmp.eq.s32.totalorder %v1192_v13, 3  ;;  %v398_v23 = vld [vmem:[%s1188_s6 + $0x2] sm:$0x1] }
  0x66   : > { %v375_v42 = vadd.f32 %v374_v39, %v373_v19  ;;  %785 = vpow2.f32 %v296_v34  ;;  %v391_v44 = vadd.f32 %v390_v40, %v389_v33  ;;  %v405_v45 = vadd.f32 %v685_v43, %v684_v41  ;;  %v414_v34 = vld [vmem:[%s1188_s6 + $0x3] sm:$0x1] }
  0x67   : > { %vm416_vm7 = vcmp.eq.s32.totalorder %v1194_v14, 3  ;;  %787 = vpow2.f32 %v298_v35  ;;  %v686_v47 = vsel %vm415_vm6, 1.0, %v983_v0  ;;  %vm431_vm8 = vcmp.eq.s32.totalorder %v1192_v13, 4 }
  0x68   : > { %v376_v46 = vrot.slane %v375_v42, 2  ;;  %v687_v48 = vsel %vm416_vm7, 1.0, %v983_v0  ;;  %789 = vpow2.f32 %v300_v36  ;;  %v392_v49 = vrot.slane %v391_v44, 2 }
  0x69   : > { %v406_v50 = vrot.slane %v405_v45, 4  ;;  %v421_v51 = vadd.f32 %v687_v48, %v686_v47  ;;  %791 = vpow2.f32 %v302_v37  ;;  %vm432_vm9 = vcmp.eq.s32.totalorder %v1194_v14, 4 }
  0x6a   : > { %v377_v52 = vadd.f32 %v376_v46, %v375_v42  ;;  %793 = vpow2.f32 %v304_v38  ;;  %v393_v53 = vadd.f32 %v392_v49, %v391_v44  ;;  %v688_v57 = vsel %vm431_vm8, 1.0, %v983_v0 }
  0x6b   : > { %v407_v54 = vadd.f32 %v406_v50, %v405_v45  ;;  %v422_v55 = vrot.slane %v421_v51, 4  ;;  %v689_v58 = vsel %vm432_vm9, 1.0, %v983_v0  ;;  %vm447_vm10 = vcmp.eq.s32.totalorder %v1192_v13, 5  ;;  %v430_v50 = vld [vmem:[%s1188_s6 + $0x4] sm:$0x1] }
  0x6c   : > { %v378_v56 = vrot.slane %v377_v52, 1  ;;  %v394_v60 = vrot.slane %v393_v53, 1  ;;  %v437_v63 = vadd.f32 %v689_v58, %v688_v57  ;;  %vm448_vm11 = vcmp.eq.s32.totalorder %v1194_v14, 5  ;;  %v446_v58 = vld [vmem:[%s1188_s6 + $0x5] sm:$0x1] }
  0x6d   : > { %v408_v61 = vrot.slane %v407_v54, 2  ;;  %v423_v62 = vadd.f32 %v422_v55, %v421_v51  ;;  %v1220_v1 = vpop.eup %779  ;;  %v690_v4 = vsel %vm447_vm10, 1.0, %v983_v0  ;;  %vm463_vm12 = vcmp.eq.s32.totalorder %v1192_v13, 6 }
  0x6e   : > { %v379_v2 = vadd.f32 %v378_v56, %v377_v52  ;;  %v1226_v5 = vpop.eup %781  ;;  %v395_v6 = vadd.f32 %v394_v60, %v393_v53  ;;  %v438_v9 = vrot.slane %v437_v63, 4  ;;  %v691_v12 = vsel %vm448_vm11, 1.0, %v983_v0 }
  0x6f   : > { %v409_v7 = vadd.f32 %v408_v61, %v407_v54  ;;  %v424_v8 = vrot.slane %v423_v62, 2  ;;  %v1228_v10 = vpop.eup %783  ;;  %vm464_vm13 = vcmp.eq.s32.totalorder %v1194_v14, 6  ;;  %v692_v15 = vsel %vm463_vm12, 1.0, %v983_v0 }
  0x70   : > { %v380_v11 = vadd.f32 %v379_v2, %v366_v59  ;;  %v1233_v16 = vpop.eup %785  ;;  %v306_v17 = vadd.f32 %v1228_v10, %v1220_v1  ;;  %v396_v18 = vadd.f32 %v395_v6, %v382_v3  ;;  %v439_v24 = vadd.f32 %v438_v9, %v437_v63 }
  0x71   : > { %v410_v19 = vrot.slane %v409_v7, 1  ;;  %v425_v20 = vadd.f32 %v424_v8, %v423_v62  ;;  %v788_v21 = vpop.eup %787  ;;  %v309_v22 = vadd.f32 %v1233_v16, %v1226_v5  ;;  %v453_v25 = vadd.f32 %v691_v12, %v690_v4  ;;  %v462_v62 = vld [vmem:[%s1188_s6 + $0x6] sm:$0x1] }
  0x72   : > { %381 = vst [vmem:[%s1188_s6] sm:$0x1] %v380_v11  ;;  %v693_v26 = vsel %vm464_vm13, 1.0, %v983_v0  ;;  %v790_v27 = vpop.eup %789  ;;  %v307_v28 = vadd.f32 %v788_v21, %v306_v17  ;;  %397 = vst [vmem:[%s1188_s6 + $0x1] sm:$0x1] %v396_v18  ;;  %v440_v35 = vrot.slane %v439_v24, 2  ;;  %vm479_vm14 = vcmp.eq.s32.totalorder %v1192_v13, 7 }
  0x73   : > { %v411_v29 = vadd.f32 %v410_v19, %v409_v7  ;;  %v426_v30 = vrot.slane %v425_v20, 1  ;;  %v469_v31 = vadd.f32 %v693_v26, %v692_v15  ;;  %v792_v32 = vpop.eup %791  ;;  %v310_v33 = vadd.f32 %v790_v27, %v309_v22 }
  0x74   : > { %v454_v36 = vrot.slane %v453_v25, 4  ;;  %v794_v37 = vpop.eup %793  ;;  %v308_v38 = vadd.f32 %v792_v32, %v307_v28  ;;  %v441_v43 = vadd.f32 %v440_v35, %v439_v24  ;;  %vm480_vm15 = vcmp.eq.s32.totalorder %v1194_v14, 7 }
  0x75   : > { %v412_v39 = vadd.f32 %v411_v29, %v398_v23  ;;  %v427_v40 = vadd.f32 %v426_v30, %v425_v20  ;;  %v470_v41 = vrot.slane %v469_v31, 4  ;;  %v311_v42 = vadd.f32 %v794_v37, %v310_v33 }
  0x76   : > { %v455_v44 = vadd.f32 %v454_v36, %v453_v25  ;;  %795 = vrcp.f32 %v308_v38  ;;  %v694_v47 = vsel %vm479_vm14, 1.0, %v983_v0  ;;  %v442_v13 = vrot.slane %v441_v43, 1 }
  0x77   : > { %413 = vst [vmem:[%s1188_s6 + $0x2] sm:$0x1] %v412_v39  ;;  %v428_v45 = vadd.f32 %v427_v40, %v414_v34  ;;  %v471_v46 = vadd.f32 %v470_v41, %v469_v31  ;;  %797 = vrcp.f32 %v311_v42  ;;  %v695_v49 = vsel %vm480_vm15, 1.0, %v983_v0 }
  0x78   : > { %v456_v48 = vrot.slane %v455_v44, 2  ;;  %v485_v52 = vadd.f32 %v695_v49, %v694_v47  ;;  %v443_v53 = vadd.f32 %v442_v13, %v441_v43 }
  0x79   : > { %429 = vst [vmem:[%s1188_s6 + $0x3] sm:$0x1] %v428_v45  ;;  %v472_v51 = vrot.slane %v471_v46, 2 }
  0x7a   : > { %v457_v14 = vadd.f32 %v456_v48, %v455_v44  ;;  %v486_v55 = vrot.slane %v485_v52, 4  ;;  %v444_v56 = vadd.f32 %v443_v53, %v430_v50 }
  0x7b   : > { %v473_v54 = vadd.f32 %v472_v51, %v471_v46 }
  0x7c   : > { %v458_v57 = vrot.slane %v457_v14, 1  ;;  %v487_v60 = vadd.f32 %v486_v55, %v485_v52  ;;  %445 = vst [vmem:[%s1188_s6 + $0x4] sm:$0x1] %v444_v56 }
  0x7d   : > { %v474_v59 = vrot.slane %v473_v54, 1 }
  0x7e   : > { %v459_v61 = vadd.f32 %v458_v57, %v457_v14  ;;  %v488_v0 = vrot.slane %v487_v60, 2 }
  0x7f   : > { %v475_v63 = vadd.f32 %v474_v59, %v473_v54 }
  0x80   : > { %v460_v2 = vadd.f32 %v459_v61, %v446_v58  ;;  %v796_v3 = vpop.eup %795  ;;  %v489_v6 = vadd.f32 %v488_v0, %v487_v60 }
  0x81   : > { %v476_v4 = vadd.f32 %v475_v63, %v462_v62  ;;  %v798_v7 = vpop.eup %797  ;;  %v315_v8 = vmul.f32 %v796_v3, %v1220_v1  ;;  %v317_v9 = vmul.f32 %v796_v3, %v1228_v10  ;;  %v319_v11 = vmul.f32 %v796_v3, %v788_v21  ;;  %v478_v1 = vld [vmem:[%s1188_s6 + $0x7] sm:$0x1] }
  0x82   : > { %v321_v12 = vmul.f32 %v796_v3, %v792_v32  ;;  %461 = vst [vmem:[%s1188_s6 + $0x5] sm:$0x1] %v460_v2  ;;  %v316_v15 = vmul.f32 %v798_v7, %v1226_v5  ;;  %v318_v17 = vmul.f32 %v798_v7, %v1233_v16  ;;  %v320_v18 = vmul.f32 %v798_v7, %v790_v27 }
  0x83   : > { %v322_v19 = vmul.f32 %v798_v7, %v794_v37  ;;  %477 = vst [vmem:[%s1188_s6 + $0x6] sm:$0x1] %v476_v4  ;;  %v490_v20 = vrot.slane %v489_v6, 1 }
  0x84   : > { %v323_v22 = vadd.f32 %v316_v15, %v315_v8  ;;  %v330_v23 = vadd.f32 %v318_v17, %v317_v9  ;;  %v337_v24 = vadd.f32 %v320_v18, %v319_v11 }
  0x85   : > { %v344_v25 = vadd.f32 %v322_v19, %v321_v12  ;;  %v491_v10 = vadd.f32 %v490_v20, %v489_v6 }
  0x86   : > { %v324_v21 = vrot.slane %v323_v22, 4  ;;  %v331_v26 = vrot.slane %v330_v23, 4  ;;  %v338_v28 = vrot.slane %v337_v24, 4 }
  0x87   : > { %v345_v5 = vrot.slane %v344_v25, 4  ;;  %v492_v16 = vadd.f32 %v491_v10, %v478_v1 }
  0x88   : > { %v325_v27 = vadd.f32 %v324_v21, %v323_v22  ;;  %v332_v29 = vadd.f32 %v331_v26, %v330_v23  ;;  %v339_v30 = vadd.f32 %v338_v28, %v337_v24 }
  0x89   : > { %v346_v31 = vadd.f32 %v345_v5, %v344_v25  ;;  %493 = vst [vmem:[%s1188_s6 + $0x7] sm:$0x1] %v492_v16 }
  0x8a   : > { %v326_v32 = vrot.slane %v325_v27, 2  ;;  %v333_v33 = vrot.slane %v332_v29, 2  ;;  %v340_v34 = vrot.slane %v339_v30, 2 }
  0x8b   : > { %v347_v35 = vrot.slane %v346_v31, 2 }
  0x8c   : > { %872 = shalt.err (!%p869_p11)
}
  0x8d   : > { %s873_s7 = scalar_lea.hbm %s1266_s10, 128  ;;  %s877_s29 = scalar_lea.hbm %s1352_s3, 256 }
  0x8e   : > { %p874_p1 = scmp.ne.s32.totalorder %s1266_s10, %s873_s7  ;;  %p878_p5 = scmp.lt.u32.totalorder %s1266_s10, %s1352_s3 }
  0x8f   : > { %p879_p4 = scmp.lt.u32.totalorder %s877_s29, %s873_s7  ;;  %p881_p0 = scmp.lt.u32.totalorder %s873_s7, %s1266_s10 }
  0x90   : > { %p875_p6 = pnand %p874_p1, %p1363_p3 }
  0x91   : > { %p880_p8 = por %p879_p4, %p878_p5 }
  0x92   : > { %p876_p2 = pneg %p875_p6 }
  0x93   : > { %p882_p12 = por %p881_p0, %p880_p8 }
  0x95   : > { %p883_p13 = pnand %p882_p12, %p876_p2 }
  0x97   : > { %886 = shalt.err (!%p883_p13)
}
  0x98   : > { %709 = dma.vmem_to_hbm [thread:$0]  (%p1363_p3), %s1268_s23, 128, %s1266_s10, %s500_s5   ;;  %v327_v36 = vadd.f32 %v326_v32, %v325_v27  ;;  %v334_v37 = vadd.f32 %v333_v33, %v332_v29  ;;  %v341_v38 = vadd.f32 %v340_v34, %v339_v30  ;;  %v348_v39 = vadd.f32 %v347_v35, %v346_v31  ;;  %v314_v13 = vld [vmem:[%s1184_s4] sm:$0xf] }
  0x99   : > { %vm355_vm0 = vcmask 1041409   ;;  %vm357_vm1 = vcmask 1042434   ;;  %vm359_vm2 = vcmask 1043459   ;;  %s698_s23 = sshll.u32 %s969_s15, 6  ;;  %s513_s18 = sshll.u32 %s1184_s4, 4  ;;  %s1301_s18 = int_to_ptr.vmem [resolvable:$true] %s513_s18 }
  0x9a   : > { %v328_v40 = vrot.slane %v327_v36, 1  ;;  %v335_v41 = vrot.slane %v334_v37, 1  ;;  %v342_v42 = vrot.slane %v341_v38, 1  ;;  %v349_v43 = vrot.slane %v348_v39, 1  ;;  %s1299_s5 = scalar_lea.hbm %s1351_s2, %s698_s23  ;;  %s495_s19 = scalar_lea.sflag [#allocation4], %s1168_s8 }
  0x9b   : > { %s887_s22 = scalar_lea.vmem %s1301_s18, 64  ;;  %s985_s15 = smov [#allocation7]  }
  0x9c   : > { %v329_v44 = vadd.f32 %v328_v40, %v327_v36  ;;  %v336_v45 = vadd.f32 %v335_v41, %v334_v37  ;;  %v343_v46 = vadd.f32 %v342_v42, %v341_v38  ;;  %v350_v47 = vadd.f32 %v349_v43, %v348_v39  ;;  %p888_p7 = scmp.ne.s32.totalorder %s1301_s18, %s887_s22  ;;  %s891_s9 = sshll.u32 %s985_s15, 4  ;;  %s892_s9 = int_to_ptr.vmem [resolvable:$false] %s891_s9 }
  0x9d   : > { %s893_s28 = scalar_lea.vmem %s892_s9, 128  ;;  %p894_p11 = scmp.lt.s32.totalorder %s1301_s18, %s892_s9 }
  0x9e   : > { %v356_v48 = vsel %vm355_vm0, %v336_v45, %v329_v44  ;;  %p889_p10 = pnand %p888_p7, %p1363_p3  ;;  %p895_p1 = scmp.lt.s32.totalorder %s893_s28, %s887_s22 }
  0x9f   : > { %v358_v49 = vsel %vm357_vm1, %v343_v46, %v356_v48 }
  0xa0   : > { %v360_v50 = vsel %vm359_vm2, %v350_v47, %v358_v49  ;;  %p890_p9 = pneg %p889_p10  ;;  %p896_p6 = por %p895_p1, %p894_p11 }
  0xa1   : > { %v362_v51 = vadd.f32 %v360_v50, %v314_v13 }
  0xa2   : > { %p897_p2 = pnand %p896_p6, %p890_p9 }
  0xa3   : > { %363 = vst [vmem:[%s1184_s4] sm:$0xf] %v362_v51 }
  0xa4   : > { %900 = shalt.err (!%p897_p2)
}
  0xa5   : > { %s901_s8 = scalar_lea.hbm %s1299_s5, 64  ;;  %s905_s11 = scalar_lea.hbm %s1351_s2, 128 }
  0xa6   : > { %p902_p5 = scmp.ne.s32.totalorder %s1299_s5, %s901_s8  ;;  %p906_p0 = scmp.lt.u32.totalorder %s1299_s5, %s1351_s2 }
  0xa7   : > { %p907_p12 = scmp.lt.u32.totalorder %s905_s11, %s901_s8  ;;  %p909_p7 = scmp.lt.u32.totalorder %s901_s8, %s1299_s5 }
  0xa8   : > { %p903_p4 = pnand %p902_p5, %p1363_p3 }
  0xa9   : > { %p908_p13 = por %p907_p12, %p906_p0 }
  0xaa   : > { %p904_p8 = pneg %p903_p4 }
  0xab   : > { %p910_p10 = por %p909_p7, %p908_p13 }
  0xad   : > { %p911_p9 = pnand %p910_p10, %p904_p8 }
  0xaf   : > { %914 = shalt.err (!%p911_p9)
}
  0xb0   : > { %708 = dma.vmem_to_hbm [thread:$0]  (%p1363_p3), %s1301_s18, 64, %s1299_s5, %s495_s19  }
  0xb1 PF: > { %s538_s6 = sand.u32 1, %s957_s12   ;;  %p1364_p11 = scmp.ne.s32.totalorder %s1358_s27, 0 }
  0xb2   : > { %p1365_p1 = scmp.ge.s32.totalorder %s977_s17, 2  ;;  %s539_s24 = scalar_lea.sflag [#allocation4], %s538_s6 }
  0xb4   : > { %p720_p6 = pnand %p1365_p1, %p1364_p11 }
  0xb6   : > { %948 = dma.done.wait (!%p720_p6), %s539_s24, 64  }
  0xb7   : > { %950 = vsyncadd (!%p720_p6), %s539_s24, 4294967232  ;;  %s548_s23 = scalar_lea.sflag [#allocation9], %s538_s6 }
  0xb8   : > { %952 = dma.done.wait (!%p720_p6), %s548_s23, 128  }
  0xb9   : > { %954 = vsyncadd (!%p720_p6), %s548_s23, 4294967168  ;;  %s26_s17 = sadd.s32 1, %s977_s17   ;;  %s1366_s12 = smov %s961_s13 }
  0xba   : > { %p23_p2 = scmp.ge.s32.totalorder %s26_s17, 4   ;;  %s1367_s13 = smov %s965_s14 }
  0xbb   : > { %s1368_s14 = smov %s1062_s26  ;;  %s1369_s15 = smov %s973_s16 }
  0xbc   : > { %s1370_s16 = smov %s1372_s20  ;;  %25 = sbr.rel (!%p23_p2) target bundleno = 10 (0xa), region = 107 }
  0xc3   :  { %553 = vsyncpa [#allocation3], 1 }
  0xc4   :  { %555 = vsyncpa [#allocation3 + $0x1], 1 }
  0xc5   :  { %556 = vsyncpa [#allocation6], 1 }
  0xc6   :  { %558 = vsyncpa [#allocation6 + $0x1], 1 }
  0xc7   :  { %559 = vsyncpa [#allocation4], 1 }
  0xc8   :  { %561 = vsyncpa [#allocation4 + $0x1], 1 }
  0xc9   :  { %562 = vsyncpa [#allocation9], 1 }
  0xca   :  { %564 = vsyncpa [#allocation9 + $0x1], 1 }

</bundles_post_ra>
